<compile_context>
chip_gen: v7x
topology: tpu7x:2x2x1
jax: 0.10.0
libtpu: 0.0.40
codegen_flags: <defaults>
</compile_context>

<pallas_src>
import jax
import jax.numpy as jnp
from jax import lax
from jax.experimental import pallas as pl
from jax.experimental.pallas import tpu as pltpu

KH = KW = 3  # conv kernel size


def _shortcut_conv_kernel(x_ref, top_ref, bot_ref, w_ref, b_ref, o_ref):
    # x_ref  : (1, TH, W, C)   center rows (conv interior + residual)
    # top_ref: (1, 1,  W, C)   row just above the tile (clamped at image top)
    # bot_ref: (1, 1,  W, C)   row just below the tile (clamped at image bottom)
    # w_ref  : (KH*KW*C, C)    flattened conv weights (compute dtype, bf16)
    # b_ref  : (1, C)          bias, f32
    # o_ref  : (1, TH, W, C)   output tile
    h = pl.program_id(1)
    nh = pl.num_programs(1)
    _, TH, W, C = x_ref.shape
    cdt = w_ref.dtype

    center = x_ref[0]                        # (TH, W, C), input dtype (residual)
    center_c = center.astype(cdt)
    top = top_ref[0].astype(cdt)             # (1, W, C)
    bot = bot_ref[0].astype(cdt)
    # Image-border rows are zero padding (the clamped halo rows must be ignored).
    top = jnp.where(h > 0, top, jnp.zeros_like(top))
    bot = jnp.where(h < nh - 1, bot, jnp.zeros_like(bot))

    # Build the (TH+2, W+2, C) zero-padded slab in VMEM temporaries.
    rows = jnp.concatenate([top, center_c, bot], axis=0)        # (TH+2, W, C)
    zcol = jnp.zeros((TH + 2, 1, C), cdt)
    xpad = jnp.concatenate([zcol, rows, zcol], axis=1)          # (TH+2, W+2, C)

    # im2col: one lane-concatenated patch matrix, a single MXU matmul.
    taps = []
    for kh in range(KH):
        for kw in range(KW):
            taps.append(xpad[kh:kh + TH, kw:kw + W, :].reshape(TH * W, C))
    patches = jnp.concatenate(taps, axis=-1)                    # (TH*W, 9*C)

    acc = jnp.dot(patches, w_ref[...], preferred_element_type=jnp.float32)
    acc = acc + b_ref[...].astype(jnp.float32)                  # bias (1, C)
    acc = acc + center.reshape(TH * W, C).astype(jnp.float32)   # residual
    o_ref[0] = acc.reshape(TH, W, C).astype(o_ref.dtype)


def _pick_tile_h(H, W, C, N, itemsize):
    """Largest H-tile whose center block stays small, preferring >=8 grid steps."""
    budget = 2 * 1024 * 1024  # bytes per center block; keeps double-buffered
    #                           in/out blocks + temporaries well inside VMEM.
    divisors = sorted((d for d in range(1, H + 1) if H % d == 0), reverse=True)
    fitting = [d for d in divisors if d * W * C * itemsize <= budget]
    if not fitting:
        return 1
    for d in fitting:
        if N * (H // d) >= 8:
            return d
    return fitting[0]  # can't reach 8 steps anyway; use the biggest fitting tile


def shortcut_block(x_nchw, w_oihw, bias, *, compute_dtype=jnp.bfloat16,
                   tile_h=None):
    """out = x + conv3x3(x, w, b); NCHW in / NCHW out (PyTorch semantics)."""
    N, C, H, W = x_nchw.shape
    itemsize = jnp.dtype(x_nchw.dtype).itemsize

    # NCHW -> NHWC (channels on the lane axis).
    x_nhwc = jnp.transpose(x_nchw, (0, 2, 3, 1))

    # (Cout, Cin, KH, KW) -> (KH, KW, Cin, Cout) -> (KH*KW*Cin, Cout), bf16.
    w_flat = jnp.transpose(w_oihw, (2, 3, 1, 0)).reshape(KH * KW * C, C)
    w_flat = w_flat.astype(compute_dtype)
    b2d = bias.reshape(1, C).astype(jnp.float32)

    if tile_h is None:
        tile_h = _pick_tile_h(H, W, C, N, itemsize)
    assert H % tile_h == 0, "tile_h must divide H"
    nh = H // tile_h
    th = tile_h

    # Rough VMEM estimate: double-buffered in/out/halo blocks + weights + the
    # in-kernel padded slab / im2col temporaries. Only raise the scoped limit
    # when we would exceed the smallest default (16 MiB on v5e).
    cbytes = jnp.dtype(compute_dtype).itemsize
    block_bytes = (
        2 * (th * W * C * itemsize)          # center input (double buffered)
        + 2 * (th * W * C * itemsize)        # output
        + 4 * (W * C * itemsize)             # two halo rows
        + 2 * (KH * KW * C * C * cbytes)     # weights
        + 2 * (C * 4))                       # bias
    temp_bytes = ((th + 2) * (W + 2) * C * cbytes          # padded slab
                  + 2 * th * W * KH * KW * C * cbytes      # taps + patches
                  + 3 * th * W * C * 4)                    # f32 accumulator
    est = int(block_bytes + temp_bytes)
    vmem_limit = None
    if est > 16 * 1024 * 1024:
        vmem_limit = int(min(2 * est, 100 * 1024 * 1024))

    out_nhwc = pl.pallas_call(
        _shortcut_conv_kernel,
        out_shape=jax.ShapeDtypeStruct((N, H, W, C), x_nchw.dtype),
        grid_spec=pltpu.PrefetchScalarGridSpec(
            num_scalar_prefetch=0,
            grid=(N, nh),
            in_specs=[
                # center TH rows of this tile (also the residual)
                pl.BlockSpec((1, th, W, C), lambda n, h: (n, h, 0, 0)),
                # halo row above (block size 1 on H => block index == row index)
                pl.BlockSpec((1, 1, W, C),
                             lambda n, h: (n, jnp.maximum(h * th - 1, 0), 0, 0)),
                # halo row below
                pl.BlockSpec((1, 1, W, C),
                             lambda n, h: (n, jnp.minimum(h * th + th, H - 1), 0, 0)),
                pl.BlockSpec((KH * KW * C, C), lambda n, h: (0, 0)),
                pl.BlockSpec((1, C), lambda n, h: (0, 0)),
            ],
            out_specs=pl.BlockSpec((1, th, W, C), lambda n, h: (n, h, 0, 0)),
        ),
        compiler_params=pltpu.CompilerParams(
            dimension_semantics=("parallel", "parallel"),
            vmem_limit_bytes=vmem_limit),
    )(x_nhwc, x_nhwc, x_nhwc, w_flat, b2d)

    # NHWC -> NCHW
    return jnp.transpose(out_nhwc, (0, 3, 1, 2))


def _reference(x_nchw, w_oihw, bias):
    """Pure-JAX reference: x + conv2d(x) in NCHW, f32."""
    conv = lax.conv_general_dilated(
        x_nchw.astype(jnp.float32), w_oihw.astype(jnp.float32),
        window_strides=(1, 1), padding=((1, 1), (1, 1)),
        dimension_numbers=("NCHW", "OIHW", "NCHW"))
    conv = conv + bias.astype(jnp.float32)[None, :, None, None]
    return (x_nchw.astype(jnp.float32) + conv).astype(x_nchw.dtype)


if __name__ == "__main__":
    N, C, H, W = 2, 4, 16, 16

    key = jax.random.PRNGKey(0)
    kx, kw_, kb = jax.random.split(key, 3)
    x = jax.random.normal(kx, (N, C, H, W), dtype=jnp.float32)
    # Conv2d(C, C, 3, padding=1) parameter shapes.
    w = jax.random.normal(kw_, (C, C, KH, KW), dtype=jnp.float32) * 0.1
    b = jax.random.normal(kb, (C,), dtype=jnp.float32) * 0.1

    out = shortcut_block(x, w, b)
    out = jax.block_until_ready(out)

    ref = _reference(x, w, b)
    assert out.shape == (N, C, H, W)
    # bf16 matmul inputs (f32 accumulation) => compare at bf16-level tolerance.
    assert jnp.allclose(out, ref, atol=5e-2, rtol=5e-2), "mismatch vs reference"

    print("KERNEL_OK")
</pallas_src>

<mosaic_0001>
module attributes {stable_mosaic.version = 11 : i64} {
  func.func @_shortcut_conv_kernel(%arg0: i32, %arg1: i32, %arg2: memref<1x4x16x4xf32, #tpu.memory_space<vmem>>, %arg3: memref<1x1x16x4xf32, #tpu.memory_space<vmem>>, %arg4: memref<1x1x16x4xf32, #tpu.memory_space<vmem>>, %arg5: memref<36x4xbf16, #tpu.memory_space<vmem>>, %arg6: memref<1x4xf32, #tpu.memory_space<vmem>>, %arg7: memref<1x4x16x4xf32, #tpu.memory_space<vmem>>) attributes {dimension_semantics = [#tpu.dimension_semantics<parallel>, #tpu.dimension_semantics<parallel>], iteration_bounds = array<i64: 2, 4>, scalar_prefetch = 0 : i64, scratch_operands = 0 : i64, tpu.core_type = #tpu.core_type<tc>, window_params = [{transform_indices = @transform_0, window_bounds = array<i64: 1, 4, 16, 4>}, {transform_indices = @transform_1, window_bounds = array<i64: 1, 1, 16, 4>}, {transform_indices = @transform_2, window_bounds = array<i64: 1, 1, 16, 4>}, {pipeline_mode = #tpu.pipeline_mode<synchronous>, transform_indices = @transform_3, window_bounds = array<i64: 36, 4>}, {pipeline_mode = #tpu.pipeline_mode<synchronous>, transform_indices = @transform_4, window_bounds = array<i64: 1, 4>}, {transform_indices = @transform_5, window_bounds = array<i64: 1, 4, 16, 4>}]} {
    %c0 = arith.constant 0 : index
    %c0_0 = arith.constant 0 : index
    %c0_1 = arith.constant 0 : index
    %c0_2 = arith.constant 0 : index
    %0 = vector.load %arg2[%c0, %c0_0, %c0_1, %c0_2] : memref<1x4x16x4xf32, #tpu.memory_space<vmem>>, vector<1x4x16x4xf32>
    %1 = vector.shape_cast %0 : vector<1x4x16x4xf32> to vector<4x16x4xf32>
    %2 = arith.truncf %1 : vector<4x16x4xf32> to vector<4x16x4xbf16>
    %c0_3 = arith.constant 0 : index
    %c0_4 = arith.constant 0 : index
    %c0_5 = arith.constant 0 : index
    %c0_6 = arith.constant 0 : index
    %3 = vector.load %arg3[%c0_3, %c0_4, %c0_5, %c0_6] : memref<1x1x16x4xf32, #tpu.memory_space<vmem>>, vector<1x1x16x4xf32>
    %4 = vector.shape_cast %3 : vector<1x1x16x4xf32> to vector<1x16x4xf32>
    %5 = arith.truncf %4 : vector<1x16x4xf32> to vector<1x16x4xbf16>
    %c0_7 = arith.constant 0 : index
    %c0_8 = arith.constant 0 : index
    %c0_9 = arith.constant 0 : index
    %c0_10 = arith.constant 0 : index
    %6 = vector.load %arg4[%c0_7, %c0_8, %c0_9, %c0_10] : memref<1x1x16x4xf32, #tpu.memory_space<vmem>>, vector<1x1x16x4xf32>
    %7 = vector.shape_cast %6 : vector<1x1x16x4xf32> to vector<1x16x4xf32>
    %8 = arith.truncf %7 : vector<1x16x4xf32> to vector<1x16x4xbf16>
    %c0_i32 = arith.constant 0 : i32
    %9 = arith.cmpi sgt, %arg1, %c0_i32 : i32
    %cst = arith.constant 0.000000e+00 : bf16
    %10 = vector.broadcast %cst : bf16 to vector<1x16x4xbf16>
    %11 = arith.select %9, %5, %10 : vector<1x16x4xbf16>
    %c3_i32 = arith.constant 3 : i32
    %12 = arith.cmpi slt, %arg1, %c3_i32 : i32
    %cst_11 = arith.constant 0.000000e+00 : bf16
    %13 = vector.broadcast %cst_11 : bf16 to vector<1x16x4xbf16>
    %14 = arith.select %12, %8, %13 : vector<1x16x4xbf16>
    %15 = tpu.concatenate %11, %2, %14 in 0 : vector<1x16x4xbf16>, vector<4x16x4xbf16>, vector<1x16x4xbf16> -> vector<6x16x4xbf16>
    %cst_12 = arith.constant 0.000000e+00 : bf16
    %16 = vector.broadcast %cst_12 : bf16 to vector<6x1x4xbf16>
    %17 = tpu.concatenate %16, %15, %16 in 1 : vector<6x1x4xbf16>, vector<6x16x4xbf16>, vector<6x1x4xbf16> -> vector<6x18x4xbf16>
    %18 = vector.extract_strided_slice %17 {offsets = [0, 0, 0], sizes = [4, 16, 4], strides = [1, 1, 1]} : vector<6x18x4xbf16> to vector<4x16x4xbf16>
    %19 = vector.shape_cast %18 : vector<4x16x4xbf16> to vector<64x4xbf16>
    %20 = vector.extract_strided_slice %17 {offsets = [0, 1, 0], sizes = [4, 16, 4], strides = [1, 1, 1]} : vector<6x18x4xbf16> to vector<4x16x4xbf16>
    %21 = vector.shape_cast %20 : vector<4x16x4xbf16> to vector<64x4xbf16>
    %22 = vector.extract_strided_slice %17 {offsets = [0, 2, 0], sizes = [4, 16, 4], strides = [1, 1, 1]} : vector<6x18x4xbf16> to vector<4x16x4xbf16>
    %23 = vector.shape_cast %22 : vector<4x16x4xbf16> to vector<64x4xbf16>
    %24 = vector.extract_strided_slice %17 {offsets = [1, 0, 0], sizes = [4, 16, 4], strides = [1, 1, 1]} : vector<6x18x4xbf16> to vector<4x16x4xbf16>
    %25 = vector.shape_cast %24 : vector<4x16x4xbf16> to vector<64x4xbf16>
    %26 = vector.extract_strided_slice %17 {offsets = [1, 1, 0], sizes = [4, 16, 4], strides = [1, 1, 1]} : vector<6x18x4xbf16> to vector<4x16x4xbf16>
    %27 = vector.shape_cast %26 : vector<4x16x4xbf16> to vector<64x4xbf16>
    %28 = vector.extract_strided_slice %17 {offsets = [1, 2, 0], sizes = [4, 16, 4], strides = [1, 1, 1]} : vector<6x18x4xbf16> to vector<4x16x4xbf16>
    %29 = vector.shape_cast %28 : vector<4x16x4xbf16> to vector<64x4xbf16>
    %30 = vector.extract_strided_slice %17 {offsets = [2, 0, 0], sizes = [4, 16, 4], strides = [1, 1, 1]} : vector<6x18x4xbf16> to vector<4x16x4xbf16>
    %31 = vector.shape_cast %30 : vector<4x16x4xbf16> to vector<64x4xbf16>
    %32 = vector.extract_strided_slice %17 {offsets = [2, 1, 0], sizes = [4, 16, 4], strides = [1, 1, 1]} : vector<6x18x4xbf16> to vector<4x16x4xbf16>
    %33 = vector.shape_cast %32 : vector<4x16x4xbf16> to vector<64x4xbf16>
    %34 = vector.extract_strided_slice %17 {offsets = [2, 2, 0], sizes = [4, 16, 4], strides = [1, 1, 1]} : vector<6x18x4xbf16> to vector<4x16x4xbf16>
    %35 = vector.shape_cast %34 : vector<4x16x4xbf16> to vector<64x4xbf16>
    %36 = tpu.concatenate %19, %21, %23, %25, %27, %29, %31, %33, %35 in 1 : vector<64x4xbf16>, vector<64x4xbf16>, vector<64x4xbf16>, vector<64x4xbf16>, vector<64x4xbf16>, vector<64x4xbf16>, vector<64x4xbf16>, vector<64x4xbf16>, vector<64x4xbf16> -> vector<64x36xbf16>
    %c0_13 = arith.constant 0 : index
    %c0_14 = arith.constant 0 : index
    %37 = vector.load %arg5[%c0_13, %c0_14] : memref<36x4xbf16, #tpu.memory_space<vmem>>, vector<36x4xbf16>
    %cst_15 = arith.constant dense<0.000000e+00> : vector<64x4xf32>
    %38 = tpu.matmul %36, %37, %cst_15 {dimension_numbers = #tpu.dot_dimension_numbers<[1], [0], [0], [1], [0, 0, 1, 1], [], []>} : vector<64x36xbf16>, vector<36x4xbf16>, vector<64x4xf32> -> vector<64x4xf32>
    %c0_16 = arith.constant 0 : index
    %c0_17 = arith.constant 0 : index
    %39 = vector.load %arg6[%c0_16, %c0_17] : memref<1x4xf32, #tpu.memory_space<vmem>>, vector<1x4xf32>
    %40 = vector.broadcast %39 : vector<1x4xf32> to vector<64x4xf32>
    %41 = arith.addf %38, %40 : vector<64x4xf32>
    %42 = vector.shape_cast %1 : vector<4x16x4xf32> to vector<64x4xf32>
    %43 = arith.addf %41, %42 : vector<64x4xf32>
    %44 = vector.shape_cast %43 : vector<64x4xf32> to vector<4x16x4xf32>
    %c0_18 = arith.constant 0 : index
    %c0_19 = arith.constant 0 : index
    %c0_20 = arith.constant 0 : index
    %c0_21 = arith.constant 0 : index
    %45 = vector.load %arg7[%c0_18, %c0_19, %c0_20, %c0_21] : memref<1x4x16x4xf32, #tpu.memory_space<vmem>>, vector<1x4x16x4xf32>
    %46 = vector.shape_cast %45 : vector<1x4x16x4xf32> to vector<4x16x4xf32>
    %47 = vector.shape_cast %44 : vector<4x16x4xf32> to vector<1x4x16x4xf32>
    tpu.vector_store %arg7[%c0_18, %c0_19, %c0_20, %c0_21], %47 {strides = array<i32>} : memref<1x4x16x4xf32, #tpu.memory_space<vmem>>, vector<1x4x16x4xf32>,
    return
  }
  func.func @transform_0(%arg0: i32, %arg1: i32) -> (i32, i32, i32, i32) {
    %c0_i32 = arith.constant 0 : i32
    %c0_i32_0 = arith.constant 0 : i32
    %c0_i32_1 = arith.constant 0 : i32
    return %arg0, %arg1, %c0_i32, %c0_i32_0 : i32, i32, i32, i32
  }
  func.func @transform_1(%arg0: i32, %arg1: i32) -> (i32, i32, i32, i32) {
    %c4_i32 = arith.constant 4 : i32
    %0 = arith.muli %arg1, %c4_i32 : i32
    %c1_i32 = arith.constant 1 : i32
    %1 = arith.subi %0, %c1_i32 : i32
    %c0_i32 = arith.constant 0 : i32
    %2 = arith.maxsi %1, %c0_i32 : i32
    %c0_i32_0 = arith.constant 0 : i32
    %c0_i32_1 = arith.constant 0 : i32
    %c0_i32_2 = arith.constant 0 : i32
    return %arg0, %2, %c0_i32_0, %c0_i32_1 : i32, i32, i32, i32
  }
  func.func @transform_2(%arg0: i32, %arg1: i32) -> (i32, i32, i32, i32) {
    %c4_i32 = arith.constant 4 : i32
    %0 = arith.muli %arg1, %c4_i32 : i32
    %c4_i32_0 = arith.constant 4 : i32
    %1 = arith.addi %0, %c4_i32_0 : i32
    %c15_i32 = arith.constant 15 : i32
    %2 = arith.minsi %1, %c15_i32 : i32
    %c0_i32 = arith.constant 0 : i32
    %c0_i32_1 = arith.constant 0 : i32
    %c0_i32_2 = arith.constant 0 : i32
    return %arg0, %2, %c0_i32, %c0_i32_1 : i32, i32, i32, i32
  }
  func.func @transform_3(%arg0: i32, %arg1: i32) -> (i32, i32) {
    %c0_i32 = arith.constant 0 : i32
    %c0_i32_0 = arith.constant 0 : i32
    %c0_i32_1 = arith.constant 0 : i32
    return %c0_i32, %c0_i32_0 : i32, i32
  }
  func.func @transform_4(%arg0: i32, %arg1: i32) -> (i32, i32) {
    %c0_i32 = arith.constant 0 : i32
    %c0_i32_0 = arith.constant 0 : i32
    %c0_i32_1 = arith.constant 0 : i32
    return %c0_i32, %c0_i32_0 : i32, i32
  }
  func.func @transform_5(%arg0: i32, %arg1: i32) -> (i32, i32, i32, i32) {
    %c0_i32 = arith.constant 0 : i32
    %c0_i32_0 = arith.constant 0 : i32
    %c0_i32_1 = arith.constant 0 : i32
    return %arg0, %arg1, %c0_i32, %c0_i32_0 : i32, i32, i32, i32
  }
}

</mosaic_0001>

<bundles_post_ra>
// kernel: tpu_custom_call.1
= control target key start
LH: loop header
LB: loop body
LE: loop exit
PB: predicated region body
PF: predicated region fallthrough
CT: control target
= control target key end

     0   :  { %s1199_s18 = smov 0   ;;  %s1201_s19 = smov 0   ;;  %s1497_s0 = inlined_call_operand.vmem [shape: f32[2,16,16,4], index: 0, kind: input, shape index: {}]   ;;  %s1498_s1 = inlined_call_operand.vmem [shape: f32[2,16,16,4], index: 1, kind: input, shape index: {}]   ;;  %s1499_s2 = inlined_call_operand.vmem [shape: f32[2,16,16,4], index: 2, kind: input, shape index: {}]   ;;  %s1500_s3 = inlined_call_operand.vmem [shape: bf16[36,4], index: 3, kind: input, shape index: {}]   ;;  %s1501_s4 = inlined_call_operand.vmem [shape: f32[1,4], index: 4, kind: input, shape index: {}]   ;;  %s1502_s5 = inlined_call_operand.vmem [shape: f32[2,16,16,4], index: 5, kind: output, shape index: {}]  }
   0x1   :  { %s1203_s20 = smov 0   ;;  %s1205_s21 = smov 0  }
   0x2   :  { %s1207_s22 = smov 0  }
   0x3 LB: > { %s24_s23 = sadd.s32 1, %s1151_s20  ;;  %s27_s24 = sadd.s32 1, %s1155_s21  ;;  %s1159_s22 = sphi %s1207_s22, %s15_s22   ;;  %s1155_s21 = sphi %s1205_s21, %s1511_s21   ;;  %s1151_s20 = sphi %s1203_s20, %s1510_s20   ;;  %s1147_s19 = sphi %s1201_s19, %s1509_s19   ;;  %s1143_s18 = sphi %s1199_s18, %s1508_s18  }
   0x4   : > { %p25_p0 = scmp.ge.s32.totalorder %s24_s23, 4  ;;  %p1003_p1 = scmp.ge.s32.totalorder %s1159_s22, 1 }
   0x5   : > { %p273_p2 = scmp.lt.s32.totalorder %s1159_s22, 9 }
   0x6   : > { %s1513_s23 = smov (%p25_p0, %s24_s23), 0  ;;  %s1515_s24 = smov (!%p25_p0, %s27_s24), %s1155_s21 }
   0x7   : > { %p274_p3 = pnand %p1003_p1, %p273_p2  ;;  %p29_p4 = scmp.ge.s32.totalorder %s1515_s24, 2 }
   0x8   : > { %s1232_s25 = sshll.u32 (!%p274_p3), %s1143_s18, 2  ;;  %p338_p5 = scmp.lt.s32.totalorder (!%p274_p3), %s1147_s19, 1  ;;  %vm476_vm0 = vcmask (!%p274_p3), 1040384   ;;  %vm477_vm1 = vsmask.f32 (!%p274_p3), 256  ;;  %vm548_vm3 = vcmask (!%p274_p3), 1046528  }
   0x9   : > { %s1517_s24 = smov (%p29_p4, %s1515_s24), 0  ;;  %277 = sbr.rel (%p274_p3) target bundleno = 430 (0x1ae), region = 40 }
   0xa   : > { %p340_p6 = scmp.lt.s32.totalorder (!%p274_p3), %s1232_s25, 15  ;;  %s1009_s30 = sadd.s32 (!%p274_p3), 4294967295, %s1232_s25  ;;  %vm1276_vm2 = vmand (!%p274_p3), %vm476_vm0, %vm477_vm1  ;;  %vm491_vm5 = vsmask.f32 (!%p274_p3), 7424  ;;  %vm767_vm7 = vcmask (!%p274_p3), 1041408   ;;  %vm659_vm8 = vcmask (!%p274_p3), 31744  }
   0xb   : > { %p350_p7 = scmp.gt.s32.totalorder (!%p274_p3), %s1009_s30, 0  ;;  %p1010_p8 = scmp.lt.s32.totalorder (!%p274_p3), %s1009_s30, 15  ;;  %v1120_v21 = vld [vmem:[%s1500_s3 + $0x10] ss:$0 sps:$4 sm:$0x33] (!%p274_p3)   ;;  %vm668_vm9 = vcmask (!%p274_p3), 64512  }
   0xc   : > { %p412_p9 = scmp.gt.s32.totalorder (!%p274_p3), %s1143_s18, 0  ;;  %s366_s15 = sadd.s32 (!%p274_p3), 4, %s1232_s25  ;;  %vm677_vm10 = vcmask (!%p274_p3), 97280   ;;  %vm686_vm11 = vcmask (!%p274_p3), 130048   ;;  %vm695_vm12 = vcmask (!%p274_p3), 162816   ;;  %vm704_vm13 = vcmask (!%p274_p3), 195584  }
   0xd   : > { %p1286_p10 = scmp.lt.s32.totalorder (!%p274_p3), %s366_s15, 15  ;;  %p417_p11 = scmp.lt.s32.totalorder (!%p274_p3), %s1143_s18, 3  ;;  %vm713_vm14 = vcmask (!%p274_p3), 228352   ;;  %vm722_vm15 = vcmask (!%p274_p3), 261120   ;;  %vm758_vm0 = vcmask (!%p274_p3), 293888  }
   0xe   : > { %s1163_s18 = smov (!%p274_p3), 4  }
  0x10   : > { %s1519_s19 = smov (!%p338_p5, %s1147_s19), 1  ;;  %s1523_s15 = smov (!%p1286_p10, %s366_s15), 15 }
  0x11   : > { %s341_s26 = scalar_select %p340_p6, %s1232_s25, 15 }
  0x12   : > { %s1236_s27 = sshll.u32 %s1519_s19, 5  ;;  %s1161_s25 = smov 12  }
  0x13   : > { %s1005_s28 = sshll.u32 %s341_s26, 1  ;;  %s1525_s15 = smov (!%p1286_p10, %s1523_s15), 15 }
  0x14   : > { %s1239_s29 = sadd.s32 %s1236_s27, %s1005_s28  ;;  %s1022_s28 = sshll.u32 %s1525_s15, 1 }
  0x15   : > { %s1007_s6 = sshll.u32 %s1239_s29, 3 }
  0x16   : > { %s346_s9 = scalar_lea.vmem %s1497_s0, %s1007_s6 }
  0x17   : > { %v1248_v0 = vld [vmem:[%s346_s9 + $0x20] sm:$0xff]  ;;  %v1250_v1 = vld [vmem:[%s346_s9 + $0x28] sm:$0xff]  ;;  %s351_s10 = scalar_select %p350_p7, %s1009_s30, 0  ;;  %v1258_v5 = vld [vmem:[%s346_s9 + $0x30] sm:$0xff] }
  0x18   : > { %v1252_v2 = vld [vmem:[%s346_s9] sm:$0xff]  ;;  %v404_v3 = vpack.c.bf16 %v1250_v1, %v1248_v0  ;;  %v1256_v4 = vld [vmem:[%s346_s9 + $0x8] sm:$0xff]  ;;  %v1260_v6 = vld [vmem:[%s346_s9 + $0x38] sm:$0xff]  ;;  %s413_s11 = scalar_select %p412_p9, 1, 0 }
  0x19   : > { %v402_v7 = vpack.c.bf16 %v1256_v4, %v1252_v2  ;;  %v405_v8 = vpack.c.bf16 %v1260_v6, %v1258_v5  ;;  %v1267_v9 = vld [vmem:[%s346_s9 + $0x10] sm:$0xff]  ;;  %v1269_v10 = vld [vmem:[%s346_s9 + $0x18] sm:$0xff]  ;;  %s1521_s10 = smov (!%p1010_p8, %s351_s10), 15  ;;  %s375_s30 = sadd.s32 %s1022_s28, %s1236_s27 }
  0x1a   : > { %v444_v11 = vshrl.u32 %v404_v3, 16  ;;  %v447_v12 = vshll.u32 %v404_v3, 16  ;;  %v403_v13 = vpack.c.bf16 %v1269_v10, %v1267_v9  ;;  %s1015_s12 = sshll.u32 %s1521_s10, 1  ;;  %v414_v24 = vstv %s413_s11  ;;  %s1024_s7 = sshll.u32 %s375_s30, 3 }
  0x1b   : > { %v430_v14 = vshrl.u32 %v402_v7, 16  ;;  %v433_v15 = vshll.u32 %v402_v7, 16  ;;  %v451_v16 = vshrl.u32 %v405_v8, 16  ;;  %v454_v17 = vshll.u32 %v405_v8, 16  ;;  %s358_s13 = sadd.s32 %s1015_s12, %s1236_s27  ;;  %s1162_s27 = smov 8  }
  0x1c   : > { %v446_v18 = vrot.slane %v444_v11, 7  ;;  %v437_v19 = vshrl.u32 %v403_v13, 16  ;;  %v440_v20 = vshll.u32 %v403_v13, 16  ;;  %s1017_s14 = sshll.u32 %s358_s13, 3  ;;  %vm1299_vm4 = vcmp.eq.s32.totalorder %v414_v24, 1  ;;  %s377_s11 = scalar_lea.vmem %s1499_s2, %s1024_s7 }
  0x1d   : > { %v432_v22 = vrot.slane %v430_v14, 7  ;;  %v1280_v23 = vrot.slane %v451_v16, 7  ;;  %s360_s19 = scalar_lea.vmem %s1498_s1, %s1017_s14  ;;  %v410_v24 = vld [vmem:[%s377_s11 + $0x8] sm:$0xff]  ;;  %s1164_s12 = smov 16  }
  0x1e   : > { %v449_v25 = vor.u32 %v447_v12, %v446_v18  ;;  %v439_v26 = vrot.slane %v437_v19, 7  ;;  %v406_v30 = vld [vmem:[%s360_s19] sm:$0xff]  ;;  %v407_v31 = vld [vmem:[%s360_s19 + $0x8] sm:$0xff]  ;;  %v488_v39 = vsel %vm1276_vm2, %v446_v18, 0  ;;  %s418_s8 = scalar_select %p417_p11, 1, 0 }
  0x1f   : > { %v435_v27 = vor.u32 %v433_v15, %v432_v22  ;;  %v456_v28 = vor.u32 %v454_v17, %v1280_v23  ;;  %v486_v29 = vsel %vm1276_vm2, %v432_v22, 0  ;;  %v408_v43 = vpack.c.bf16 %v407_v31, %v406_v30  ;;  %v409_v22 = vld [vmem:[%s377_s11] sm:$0xff]  ;;  %s1165_s13 = smov 20   ;;  %s1166_s19 = smov 24  }
  0x20   : > { %v1295_v32 = vsel %vm1276_vm2, 0, %v449_v25  ;;  %v442_v33 = vor.u32 %v440_v20, %v439_v26  ;;  %v487_v34 = vsel %vm1276_vm2, %v439_v26, 0  ;;  %v553_v38 = vrot.slane %v486_v29, 1  ;;  %s1167_s28 = smov 28   ;;  %s1168_s30 = smov 32  }
  0x21   : > { %615 = vrot.lane.b32.xlu1 %v1295_v32, %s1161_s25  ;;  %v1308_v36 = vsel %vm1276_vm2, 0, %v435_v27  ;;  %v1312_v37 = vsel %vm1276_vm2, 0, %v456_v28  ;;  %v556_v41 = vrot.slane %v487_v34, 1  ;;  %v524_v47 = vshll.u32 %v487_v34, 16  ;;  %s391_s10 = scalar_lea.vmem %s1502_s5, %s1007_s6 }
  0x22   : > { %611 = vrot.lane.b32.xlu0 %v1308_v36, %s1161_s25  ;;  %v1319_v40 = vsel %vm1276_vm2, 0, %v442_v33  ;;  %v552_v42 = vrot.slane %v1308_v36, 1  ;;  %v558_v48 = vrot.slane %v1295_v32, 1  ;;  %v559_v49 = vrot.slane %v488_v39, 1 }
  0x23   : > { %v555_v44 = vrot.slane %v1319_v40, 1  ;;  %v517_v45 = vshrl.u32 %v1319_v40, 16  ;;  %v519_v46 = vshll.u32 %v1319_v40, 16  ;;  %v416_v50 = vsel %vm1299_vm4, %v408_v43, 0 }
  0x24   : > { %v423_v52 = vshrl.u32 %v416_v50, 16  ;;  %v426_v53 = vshll.u32 %v416_v50, 16  ;;  %v505_v54 = vshrl.u32 %v1308_v36, 16  ;;  %v507_v56 = vshll.u32 %v1308_v36, 16 }
  0x25   : > { %617 = vrot.lane.b32.xlu1 %v1312_v37, %s1161_s25  ;;  %v521_v51 = vrot.slane %v519_v46, 1  ;;  %v1336_v55 = vsel %vm548_vm3, %v555_v44, %v556_v41  ;;  %v512_v57 = vshll.u32 %v486_v29, 16  ;;  %v531_v58 = vshll.u32 %v1295_v32, 16 }
  0x26   : > { %613 = vrot.lane.b32.xlu0 %v1319_v40, %s1161_s25  ;;  %v1341_v59 = vsel %vm548_vm3, %v552_v42, %v553_v38  ;;  %v526_v61 = vrot.slane %v524_v47, 1  ;;  %v425_v62 = vrot.slane %v423_v52, 7  ;;  %v509_v63 = vrot.slane %v507_v56, 1 }
  0x27   : > { %v522_v60 = vor.u32 %v521_v51, %v517_v45  ;;  %v1346_v3 = vsel %vm548_vm3, %v558_v48, %v559_v49  ;;  %v536_v11 = vshll.u32 %v488_v39, 16  ;;  %v514_v13 = vrot.slane %v512_v57, 1 }
  0x28   : > { %v428_v7 = vor.u32 %v426_v53, %v425_v62  ;;  %v485_v8 = vsel %vm1276_vm2, %v425_v62, 0  ;;  %v510_v12 = vor.u32 %v509_v63, %v505_v54  ;;  %v529_v14 = vshrl.u32 %v1295_v32, 16 }
  0x29   : > { %607 = vrot.lane.b32.xlu1 %v1336_v55, %s1162_s27  ;;  %v533_v15 = vrot.slane %v531_v58, 1  ;;  %v1359_v16 = vsel %vm491_vm5, %v522_v60, %v526_v61  ;;  %v550_v18 = vrot.slane %v485_v8, 1  ;;  %v538_v20 = vrot.slane %v536_v11, 1  ;;  %v1118_v60 = vld [vmem:[%s1500_s3] sm:$0xff]  }
  0x2a   : > { %605 = vrot.lane.b32.xlu0 %v1341_v59, %s1162_s27  ;;  %v1363_v17 = vsel %vm1276_vm2, 0, %v428_v7  ;;  %v515_v25 = vsel %vm491_vm5, %v510_v12, %v514_v13  ;;  %v564_v27 = vshll.u32 %v1312_v37, 16  ;;  %v419_v28 = vstv %s418_s8  ;;  %1048 = vmatprep.subr.bf16.mxu0 %v1118_v60 }
  0x2b   : > { %v549_v19 = vrot.slane %v1363_v17, 1  ;;  %v534_v26 = vor.u32 %v533_v15, %v529_v14  ;;  %v495_v30 = vshll.u32 %v1363_v17, 16  ;;  %v489_v31 = vsel %vm1276_vm2, %v1280_v23, 0  ;;  %1062 = vmatprep.subr.bf16.mxu1 %v1118_v60  ;;  %1049 = vmatpush3.bf16.msra.mxu0 %v1118_v60 }
  0x2c   : > { %v411_v33 = vpack.c.bf16 %v410_v24, %v409_v22  ;;  %vm420_vm6 = vcmp.eq.s32.totalorder %v419_v28, 1  ;;  %v562_v35 = vshrl.u32 %v1312_v37, 16  ;;  %v566_v38 = vrot.slane %v564_v27, 1  ;;  %1065 = vmatpush3.bf16.msra.mxu1 %v1118_v60 }
  0x2d   : > { %609 = vrot.lane.b32.xlu1 %v1346_v3, %s1162_s27  ;;  %v551_v29 = vsel %vm548_vm3, %v549_v19, %v550_v18  ;;  %v1380_v34 = vsel %vm491_vm5, %v534_v26, %v538_v20  ;;  %v569_v39 = vshll.u32 %v489_v31, 16  ;;  %v493_v41 = vshrl.u32 %v1363_v17, 16 }
  0x2e   : > { %599 = vrot.lane.b32.xlu0 %v1359_v16, %s1163_s18  ;;  %v497_v42 = vrot.slane %v495_v30, 1  ;;  %v500_v43 = vshll.u32 %v485_v8, 16  ;;  %v421_v44 = vsel %vm420_vm6, %v411_v33, 0  ;;  %v567_v23 = vor.u32 %v566_v38, %v562_v35 }
  0x2f   : > { %v571_v45 = vrot.slane %v569_v39, 1  ;;  %v458_v48 = vshrl.u32 %v421_v44, 16  ;;  %v461_v52 = vshll.u32 %v421_v44, 16  ;;  %v575_v53 = vrot.slane %v1312_v37, 1 }
  0x30   : > { %v498_v46 = vor.u32 %v497_v42, %v493_v41  ;;  %v502_v47 = vrot.slane %v500_v43, 1  ;;  %v576_v54 = vrot.slane %v489_v31, 1 }
  0x31   : > { %597 = vrot.lane.b32.xlu1 %v515_v25, %s1163_s18  ;;  %v572_v49 = vsel %vm491_vm5, %v567_v23, %v571_v45  ;;  %v460_v51 = vrot.slane %v458_v48, 7 }
  0x32   : > { %603 = vrot.lane.b32.xlu0 %v551_v29, %s1162_s27  ;;  %v503_v50 = vsel %vm491_vm5, %v498_v46, %v502_v47  ;;  %v577_v57 = vsel %vm548_vm3, %v575_v53, %v576_v54 }
  0x33   : > { %v463_v56 = vor.u32 %v461_v52, %v460_v51  ;;  %v490_v62 = vsel %vm1276_vm2, %v460_v51, 0 }
  0x34   : > { %v586_v8 = vshll.u32 %v490_v62, 16  ;;  %v593_v15 = vrot.slane %v490_v62, 1 }
  0x35   : > { %601 = vrot.lane.b32.xlu1 %v1380_v34, %s1163_s18  ;;  %v484_v58 = vsel %vm1276_vm2, 0, %v463_v56 }
  0x36   : > { %619 = vrot.lane.b32.xlu0 %v515_v25, %s1164_s12  ;;  %v581_v61 = vshll.u32 %v484_v58, 16  ;;  %v579_v63 = vshrl.u32 %v484_v58, 16  ;;  %v588_v12 = vrot.slane %v586_v8, 1  ;;  %v592_v14 = vrot.slane %v484_v58, 1 }
  0x38   : > { %v583_v7 = vrot.slane %v581_v61, 1  ;;  %v594_v18 = vsel %vm548_vm3, %v592_v14, %v593_v15 }
  0x39   : > { %623 = vrot.lane.b32.xlu1 %v1380_v34, %s1164_s12 }
  0x3a   : > { %621 = vrot.lane.b32.xlu0 %v1359_v16, %s1164_s12  ;;  %v584_v11 = vor.u32 %v583_v7, %v579_v63 }
  0x3c   : > { %v589_v13 = vsel %vm491_vm5, %v584_v11, %v588_v12 }
  0x3d   : > { %625 = vrot.lane.b32.xlu1 %v572_v49, %s1164_s12 }
  0x3e   : > { %595 = vrot.lane.b32.xlu0 %v503_v50, %s1163_s18 }
  0x41   : > { %631 = vrot.lane.b32.xlu1 %v1346_v3, %s1165_s13 }
  0x42   : > { %627 = vrot.lane.b32.xlu0 %v1341_v59, %s1165_s13  ;;  %v1119_v59 = vld [vmem:[%s1500_s3 + $0x8] sm:$0xff]  }
  0x43   : > { %1050 = vmatprep.subr.bf16.mxu0 %v1119_v59  ;;  %1063 = vmatprep.subr.bf16.mxu1 %v1119_v59 }
  0x44   : > { %1051 = vmatpush3.bf16.msra.mxu0 %v1119_v59  ;;  %1066 = vmatpush3.bf16.msra.mxu1 %v1119_v59 }
  0x45   : > { %633 = vrot.lane.b32.xlu1 %v577_v57, %s1165_s13  ;;  %1068 = vmatprep.subr.msk.bf16.mxu0 %vm767_vm7, %v1120_v21 }
  0x46   : > { %629 = vrot.lane.b32.xlu0 %v1336_v55, %s1165_s13  ;;  %1069 = vmatprep.subr.msk.bf16.mxu1 %vm767_vm7, %v1120_v21 }
  0x49   : > { %639 = vrot.lane.b32.xlu1 %v1312_v37, %s1166_s19  ;;  %v769_v37 = vsel %vm767_vm7, %v1120_v21, 0 }
  0x4a   : > { %635 = vrot.lane.b32.xlu0 %v1319_v40, %s1166_s19  ;;  %1053 = vmatpush3.bf16.msra.mxu0 %v769_v37 }
  0x4b   : > { %1067 = vmatpush3.bf16.msra.mxu1 %v769_v37 }
  0x4d   : > { %641 = vrot.lane.b32.xlu1 %v484_v58, %s1166_s19 }
  0x4e   : > { %637 = vrot.lane.b32.xlu0 %v1295_v32, %s1166_s19 }
  0x51   : > { %647 = vrot.lane.b32.xlu1 %v572_v49, %s1167_s28 }
  0x52   : > { %643 = vrot.lane.b32.xlu0 %v1359_v16, %s1167_s28 }
  0x55   : > { %649 = vrot.lane.b32.xlu1 %v589_v13, %s1167_s28 }
  0x56   : > { %645 = vrot.lane.b32.xlu0 %v1380_v34, %s1167_s28 }
  0x59   : > { %655 = vrot.lane.b32.xlu1 %v577_v57, %s1168_s30 }
  0x5a   : > { %651 = vrot.lane.b32.xlu0 %v1336_v55, %s1168_s30 }
  0x5d   : > { %657 = vrot.lane.b32.xlu1 %v594_v18, %s1168_s30 }
  0x5e   : > { %653 = vrot.lane.b32.xlu0 %v1346_v3, %s1168_s30 }
  0x93   : > { %v616_v19 = vpop.permute.xlu1 %615 }
  0x94   : > { %v612_v20 = vpop.permute.xlu0 %611 }
  0x97   : > { %v618_v22 = vpop.permute.xlu1 %617 }
  0x98   : > { %v614_v16 = vpop.permute.xlu0 %613 }
  0x9b   : > { %v608_v24 = vpop.permute.xlu1 %607 }
  0x9c   : > { %v606_v25 = vpop.permute.xlu0 %605 }
  0x9f   : > { %v610_v26 = vpop.permute.xlu1 %609 }
  0xa0   : > { %v600_v27 = vpop.permute.xlu0 %599 }
  0xa1   : > { %v665_v46 = vsel %vm659_vm8, %v1319_v40, %v600_v27 }
  0xa2   : > { %v674_v49 = vsel %vm668_vm9, %v665_v46, %v608_v24 }
  0xa3   : > { %v598_v28 = vpop.permute.xlu1 %597  ;;  %v683_v53 = vsel %vm677_vm10, %v674_v49, %v616_v19 }
  0xa4   : > { %v604_v29 = vpop.permute.xlu0 %603 }
  0xa7   : > { %v602_v30 = vpop.permute.xlu1 %601 }
  0xa8   : > { %v620_v31 = vpop.permute.xlu0 %619  ;;  %v667_v52 = vsel %vm659_vm8, %v1295_v32, %v602_v30 }
  0xa9   : > { %v676_v56 = vsel %vm668_vm9, %v667_v52, %v610_v26 }
  0xaa   : > { %v685_v62 = vsel %vm677_vm10, %v676_v56, %v618_v22 }
  0xab   : > { %v624_v33 = vpop.permute.xlu1 %623 }
  0xac   : > { %v622_v34 = vpop.permute.xlu0 %621  ;;  %v692_v57 = vsel %vm686_vm11, %v683_v53, %v624_v33 }
  0xaf   : > { %v626_v55 = vpop.permute.xlu1 %625 }
  0xb0   : > { %v596_v35 = vpop.permute.xlu0 %595  ;;  %v694_v21 = vsel %vm686_vm11, %v685_v62, %v626_v55 }
  0xb1   : > { %v661_v44 = vsel %vm659_vm8, %v1363_v17, %v596_v35  ;;  %v663_v17 = vsel %vm659_vm8, %v1308_v36, %v598_v28  ;;  %v1029_v28 = vld [vmem:[%s1501_s4] ss:$0 sm:$0xff] }
  0xb2   : > { %v670_v47 = vsel %vm668_vm9, %v661_v44, %v604_v29  ;;  %v672_v60 = vsel %vm668_vm9, %v663_v17, %v606_v25 }
  0xb3   : > { %v632_v38 = vpop.permute.xlu1 %631  ;;  %v679_v50 = vsel %vm677_vm10, %v670_v47, %v612_v20  ;;  %v681_v8 = vsel %vm677_vm10, %v672_v60, %v614_v16 }
  0xb4   : > { %v628_v39 = vpop.permute.xlu0 %627  ;;  %v688_v40 = vsel %vm686_vm11, %v679_v50, %v620_v31  ;;  %v701_v32 = vsel %vm695_vm12, %v692_v57, %v632_v38  ;;  %v690_v13 = vsel %vm686_vm11, %v681_v8, %v622_v34 }
  0xb5   : > { %v697_v36 = vsel %vm695_vm12, %v688_v40, %v628_v39 }
  0xb7   : > { %v634_v41 = vpop.permute.xlu1 %633 }
  0xb8   : > { %v630_v3 = vpop.permute.xlu0 %629  ;;  %v703_v14 = vsel %vm695_vm12, %v694_v21, %v634_v41 }
  0xb9   : > { %v699_v18 = vsel %vm695_vm12, %v690_v13, %v630_v3 }
  0xbb   : > { %v640_v42 = vpop.permute.xlu1 %639 }
  0xbc   : > { %v636_v43 = vpop.permute.xlu0 %635  ;;  %v710_v61 = vsel %vm704_vm13, %v701_v32, %v640_v42 }
  0xbd   : > { %v706_v59 = vsel %vm704_vm13, %v697_v36, %v636_v43 }
  0xbf   : > { %v642_v23 = vpop.permute.xlu1 %641 }
  0xc0   : > { %v638_v45 = vpop.permute.xlu0 %637  ;;  %v712_v19 = vsel %vm704_vm13, %v703_v14, %v642_v23 }
  0xc1   : > { %v708_v20 = vsel %vm704_vm13, %v699_v18, %v638_v45 }
  0xc3   : > { %v648_v48 = vpop.permute.xlu1 %647 }
  0xc4   : > { %v644_v51 = vpop.permute.xlu0 %643  ;;  %v719_v63 = vsel %vm713_vm14, %v710_v61, %v648_v48 }
  0xc5   : > { %v715_v11 = vsel %vm713_vm14, %v706_v59, %v644_v51 }
  0xc7   : > { %v650_v54 = vpop.permute.xlu1 %649 }
  0xc8   : > { %v646_v58 = vpop.permute.xlu0 %645  ;;  %v721_v22 = vsel %vm713_vm14, %v712_v19, %v650_v54 }
  0xc9   : > { %v717_v24 = vsel %vm713_vm14, %v708_v20, %v646_v58 }
  0xcb   : > { %v656_v7 = vpop.permute.xlu1 %655 }
  0xcc   : > { %v652_v12 = vpop.permute.xlu0 %651  ;;  %v728_v37 = vsel %vm722_vm15, %v719_v63, %v656_v7 }
  0xcd   : > { %v724_v15 = vsel %vm722_vm15, %v715_v11, %v652_v12  ;;  %1058 = vmatprep.mubr.msk.bf16.mxu1 %vm758_vm0, %v728_v37 }
  0xce   : > { %1054 = vmatprep.mubr.msk.bf16.mxu0 %vm758_vm0, %v724_v15 }
  0xcf   : > { %v658_v16 = vpop.permute.xlu1 %657 }
  0xd0   : > { %v654_v25 = vpop.permute.xlu0 %653  ;;  %v730_v26 = vsel %vm722_vm15, %v721_v22, %v658_v16 }
  0xd1   : > { %v726_v27 = vsel %vm722_vm15, %v717_v24, %v654_v25  ;;  %1059 = vmatmul.mubr.msk.bf16.vlgmr.msra.gmra.mrb[0].mxu1 %vm758_vm0, %v730_v26 }
  0xd2   : > { %1055 = vmatmul.mubr.msk.bf16.vlgmr.msra.gmra.mrb[0].mxu0 %vm758_vm0, %v726_v27 }
 0x1a4   : > { %v1060_v29 = vpop.f32.mrb[0].mxu1 }
 0x1a5   : > { %v1056_v30 = vpop.f32.mrb[0].mxu0  ;;  %v830_v31 = vadd.f32 %v1060_v29, %v1029_v28  ;;  %v821_v33 = vpop.f32.mrb[1].mxu1 }
 0x1a6   : > { %v814_v34 = vadd.f32 %v1056_v30, %v1029_v28  ;;  %v805_v55 = vpop.f32.mrb[1].mxu0  ;;  %v822_v35 = vadd.f32 %v1029_v28, %v821_v33  ;;  %v1061_v38 = vpop.f32.mrb[2].mxu1 }
 0x1a7   : > { %v842_v39 = vadd.f32 %v830_v31, %v1258_v5  ;;  %v806_v41 = vadd.f32 %v1029_v28, %v805_v55  ;;  %v1057_v3 = vpop.f32.mrb[2].mxu0  ;;  %v833_v42 = vadd.f32 %v1061_v38, %v1029_v28  ;;  %v824_v43 = vpop.f32.mrb[3].mxu1 }
 0x1a8   : > { %v838_v44 = vadd.f32 %v814_v34, %v1267_v9  ;;  %v840_v23 = vadd.f32 %v822_v35, %v1248_v0  ;;  %v817_v45 = vadd.f32 %v1057_v3, %v1029_v28  ;;  %v808_v46 = vpop.f32.mrb[3].mxu0  ;;  %v825_v47 = vadd.f32 %v1029_v28, %v824_v43 }
 0x1a9   : > { %850 = vst.msk [vmem:[%s391_s10 + $0x30] sm:$0xff] %vm659_vm8, %v842_v39  ;;  %v836_v48 = vadd.f32 %v806_v41, %v1252_v2  ;;  %v843_v49 = vadd.f32 %v833_v42, %v1260_v6  ;;  %v809_v50 = vadd.f32 %v1029_v28, %v808_v46 }
 0x1aa   : > { %846 = vst.msk [vmem:[%s391_s10 + $0x10] sm:$0xff] %vm659_vm8, %v838_v44  ;;  %848 = vst.msk [vmem:[%s391_s10 + $0x20] sm:$0xff] %vm659_vm8, %v840_v23  ;;  %v839_v5 = vadd.f32 %v817_v45, %v1269_v10  ;;  %v841_v9 = vadd.f32 %v825_v47, %v1250_v1 }
 0x1ab   : > { %844 = vst.msk [vmem:[%s391_s10] sm:$0xff] %vm659_vm8, %v836_v48  ;;  %851 = vst.msk [vmem:[%s391_s10 + $0x38] sm:$0xff] %vm659_vm8, %v843_v49  ;;  %v837_v0 = vadd.f32 %v809_v50, %v1256_v4 }
 0x1ac   : > { %847 = vst.msk [vmem:[%s391_s10 + $0x18] sm:$0xff] %vm659_vm8, %v839_v5  ;;  %849 = vst.msk [vmem:[%s391_s10 + $0x28] sm:$0xff] %vm659_vm8, %v841_v9 }
 0x1ad   : > { %845 = vst.msk [vmem:[%s391_s10 + $0x8] sm:$0xff] %vm659_vm8, %v837_v0 }
 0x1ae PF: > { %s15_s22 = sadd.s32 1, %s1159_s22   ;;  %s1508_s18 = smov %s1151_s20 }
 0x1af   : > { %p12_p12 = scmp.ge.s32.totalorder %s15_s22, 10   ;;  %s1509_s19 = smov %s1155_s21 }
 0x1b0   : > { %s1510_s20 = smov %s1513_s23  ;;  %s1511_s21 = smov %s1517_s24 }
 0x1b1   :  { %14 = sbr.rel (!%p12_p12) target bundleno = 3 (0x3), region = 76 }

</bundles_post_ra>
